<compile_context>
chip_gen: v5e
topology: v5e:2x2
jax: 0.10.0
libtpu: 0.0.40
codegen_flags: <defaults>
</compile_context>

<pallas_src>
import functools

import jax
import jax.numpy as jnp
from jax.experimental import pallas as pl
from jax.experimental.pallas import tpu as pltpu


def _round_up(x, m):
    return (x + m - 1) // m * m


def _vmem_capacity_bytes():
    try:
        return int(pltpu.get_tpu_info().vmem_capacity_bytes)
    except Exception:
        return 64 << 20  # conservative fallback (v7x-sized VMEM)


# ----------------------------- kernels ------------------------------------


def _expert_kernel_resident(x_ref, w1_ref, b1_ref, w2_ref, b2_ref, o_ref, *,
                            compute_dtype):
    """Whole expert resident in VMEM (constant weight index maps); grid=(rows,)."""
    x = x_ref[...].astype(compute_dtype)                 # per-tile cast, hides under MXU
    h = jnp.dot(x, w1_ref[...], preferred_element_type=jnp.float32)
    h = jnp.maximum(h + b1_ref[...], 0.0)                # bias + ReLU in fp32
    out = jnp.dot(h.astype(compute_dtype), w2_ref[...],
                  preferred_element_type=jnp.float32)
    # Dropout: inference mode -> identity.
    o_ref[...] = (out + b2_ref[...]).astype(o_ref.dtype)


def _expert_kernel_streamed(x_ref, w1_ref, b1_ref, w2_ref, b2_ref, o_ref,
                            acc_ref, *, compute_dtype):
    """Hidden dim streamed in tk slices with fp32 accumulator; grid=(rows, hidden)."""
    k = pl.program_id(1)
    x = x_ref[...].astype(compute_dtype)
    h = jnp.dot(x, w1_ref[...], preferred_element_type=jnp.float32)
    h = jnp.maximum(h + b1_ref[...], 0.0)
    contrib = jnp.dot(h.astype(compute_dtype), w2_ref[...],
                      preferred_element_type=jnp.float32)

    @pl.when(k == 0)
    def _():
        acc_ref[...] = contrib            # store, no zero-then-RMW pass

    @pl.when(k > 0)
    def _():
        acc_ref[...] += contrib

    @pl.when(k == pl.num_programs(1) - 1)
    def _():
        # Dropout: inference mode -> identity.
        o_ref[...] = (acc_ref[...] + b2_ref[...]).astype(o_ref.dtype)


# ----------------------------- wrapper -------------------------------------


@functools.partial(
    jax.jit, static_argnames=("tile_rows", "tile_hidden", "compute_dtype"))
def expert_forward(x, w1, b1, w2, b2, *, tile_rows=None, tile_hidden=None,
                   compute_dtype=jnp.bfloat16):
    """Fused Linear -> ReLU -> Linear (-> Dropout[eval]) on TPU via Pallas.

    x : (..., n_embed)
    w1: (n_embed, n_hidden), w2: (n_hidden, n_embed)  (y = x @ W + b).
    For best performance persist w1/w2 in `compute_dtype` (cast once at init);
    the cast below is then a no-op.
    """
    orig_shape = x.shape
    out_dtype = x.dtype
    n_embed, n_hidden = w1.shape

    if w1.dtype != compute_dtype:
        w1 = w1.astype(compute_dtype)
    if w2.dtype != compute_dtype:
        w2 = w2.astype(compute_dtype)
    b1 = b1.astype(jnp.float32)
    b2 = b2.astype(jnp.float32)

    x2 = x.reshape(-1, n_embed)
    n_rows = x2.shape[0]

    x_bytes = jnp.dtype(x2.dtype).itemsize
    c_bytes = jnp.dtype(compute_dtype).itemsize
    out_bytes = jnp.dtype(out_dtype).itemsize
    sub = 16 if c_bytes == 2 else 8          # bf16 native tile is (16, 128)

    vmem_cap = _vmem_capacity_bytes()
    big_vmem = vmem_cap >= (96 << 20)        # v5e/v6e (128 MiB) vs v7x (64 MiB)
    if tile_rows is None:
        tile_rows = 1024 if big_vmem else 512
    if tile_hidden is None:
        tile_hidden = 2048 if big_vmem else 1024

    # Lane-dense embedding dim (avoid masked partial stores / underfilled MXU).
    n_embed_p = max(_round_up(n_embed, 128), 128)
    n_hidden_128 = _round_up(n_hidden, 128)

    # ---- row tile ----------------------------------------------------------
    rows1 = _round_up(n_rows, sub)
    tr = _round_up(min(tile_rows, rows1), sub)
    # Guarantee >= 2 row tiles when there is enough work so the "parallel"
    # row axis shards across both v7x TensorCores.
    if tr >= rows1 and rows1 >= 512:
        tr = _round_up((rows1 + 1) // 2, sub)

    # ---- hidden tile from a VMEM budget -------------------------------------
    budget = int(0.85 * vmem_cap)

    def _tk_budget(tr_):
        fixed = (2 * tr_ * n_embed_p * x_bytes      # x tile (double-buffered)
                 + 2 * tr_ * n_embed_p * out_bytes  # output tile (double-buffered)
                 + tr_ * n_embed_p * 4              # fp32 accumulator scratch
                 + 2 * n_embed_p * 4)               # b2
        per_tk = (2 * 2 * n_embed_p * c_bytes       # W1 + W2 slices, double-buffered
                  + 2 * 4                           # b1
                  + tr_ * (4 + c_bytes))            # h intermediate (fp32 + cast copy)
        return (budget - fixed) // per_tk

    tk_max = _tk_budget(tr)
    while tk_max < 128 and tr > sub:                # shrink rows before hidden
        tr = max(sub, _round_up(tr // 2, sub))
        tk_max = _tk_budget(tr)
    tk_max = max(tk_max, 128)

    tk = max(128, min(tile_hidden, n_hidden_128, (tk_max // 128) * 128))
    n_hidden_p = _round_up(n_hidden_128, tk)        # pad hidden, no divisor search
    nk = n_hidden_p // tk
    resident = nk == 1                               # weights DMA'd once

    rows_padded = _round_up(n_rows, tr)
    grid_i = rows_padded // tr

    # ---- padding (no-ops when dims are already aligned) ----------------------
    if n_embed_p != n_embed:
        x2 = jnp.pad(x2, ((0, 0), (0, n_embed_p - n_embed)))
        w1 = jnp.pad(w1, ((0, n_embed_p - n_embed), (0, 0)))
        w2 = jnp.pad(w2, ((0, 0), (0, n_embed_p - n_embed)))
        b2 = jnp.pad(b2, (0, n_embed_p - n_embed))
    if n_hidden_p != n_hidden:
        w1 = jnp.pad(w1, ((0, 0), (0, n_hidden_p - n_hidden)))
        b1 = jnp.pad(b1, (0, n_hidden_p - n_hidden))
        w2 = jnp.pad(w2, ((0, n_hidden_p - n_hidden), (0, 0)))
    if rows_padded != n_rows:
        x2 = jnp.pad(x2, ((0, rows_padded - n_rows), (0, 0)))

    b1r = b1.reshape(1, n_hidden_p)
    b2r = b2.reshape(1, n_embed_p)

    # ---- cost estimate: weights counted once per row tile when streamed ------
    w_elems = n_embed_p * n_hidden_p
    w_reads = 1 if resident else grid_i
    cost = pl.CostEstimate(
        flops=4 * rows_padded * n_embed_p * n_hidden_p,
        transcendentals=0,
        bytes_accessed=int(
            rows_padded * n_embed_p * (x_bytes + out_bytes)
            + w_reads * (2 * w_elems * c_bytes + n_hidden_p * 4)
            + n_embed_p * 4),
    )

    # ---- VMEM limit: only raise when needed, never above ~0.9x physical ------
    est_vmem = (2 * tr * n_embed_p * x_bytes
                + 2 * tr * n_embed_p * out_bytes
                + (0 if resident else tr * n_embed_p * 4)
                + 2 * n_embed_p * 4
                + 2 * 2 * n_embed_p * tk * c_bytes
                + 2 * tk * 4
                + tr * tk * (4 + c_bytes))
    vmem_limit = None
    if est_vmem > (32 << 20):
        vmem_limit = int(min(_round_up(est_vmem + (4 << 20), 1 << 20),
                             int(0.9 * vmem_cap)))

    # ---- pallas_call ---------------------------------------------------------
    if resident:
        kernel = functools.partial(_expert_kernel_resident,
                                   compute_dtype=compute_dtype)
        grid = (grid_i,)
        in_specs = [
            pl.BlockSpec((tr, n_embed_p), lambda i: (i, 0)),            # x tile
            pl.BlockSpec((n_embed_p, n_hidden_p), lambda i: (0, 0)),    # W1 (resident)
            pl.BlockSpec((1, n_hidden_p), lambda i: (0, 0)),            # b1
            pl.BlockSpec((n_hidden_p, n_embed_p), lambda i: (0, 0)),    # W2 (resident)
            pl.BlockSpec((1, n_embed_p), lambda i: (0, 0)),             # b2
        ]
        out_specs = pl.BlockSpec((tr, n_embed_p), lambda i: (i, 0))
        scratch_shapes = []
        dim_sem = ("parallel",)
    else:
        kernel = functools.partial(_expert_kernel_streamed,
                                   compute_dtype=compute_dtype)
        grid = (grid_i, nk)
        in_specs = [
            pl.BlockSpec((tr, n_embed_p), lambda i, k: (i, 0)),          # x tile
            pl.BlockSpec((n_embed_p, tk), lambda i, k: (0, k)),          # W1 slice
            pl.BlockSpec((1, tk), lambda i, k: (0, k)),                  # b1 slice
            pl.BlockSpec((tk, n_embed_p), lambda i, k: (k, 0)),          # W2 slice
            pl.BlockSpec((1, n_embed_p), lambda i, k: (0, 0)),           # b2
        ]
        out_specs = pl.BlockSpec((tr, n_embed_p), lambda i, k: (i, 0))
        scratch_shapes = [pltpu.VMEM((tr, n_embed_p), jnp.float32)]
        dim_sem = ("parallel", "arbitrary")

    out = pl.pallas_call(
        kernel,
        out_shape=jax.ShapeDtypeStruct((rows_padded, n_embed_p), out_dtype),
        grid_spec=pltpu.PrefetchScalarGridSpec(
            num_scalar_prefetch=0,
            grid=grid,
            in_specs=in_specs,
            out_specs=out_specs,
            scratch_shapes=scratch_shapes,
        ),
        compiler_params=pltpu.CompilerParams(
            dimension_semantics=dim_sem,
            vmem_limit_bytes=vmem_limit),
        cost_estimate=cost,
    )(x2, w1, b1r, w2, b2r)

    out = out[:n_rows, :n_embed]
    return out.reshape(orig_shape)


def init_expert_params(key, n_embed, n_hidden, dtype=jnp.float32):
    """Deterministic init mimicking nn.Linear's U(-1/sqrt(fan_in), 1/sqrt(fan_in))."""
    k1, k2, k3, k4 = jax.random.split(key, 4)
    lim1 = 1.0 / (n_embed ** 0.5)
    lim2 = 1.0 / (n_hidden ** 0.5)
    w1 = jax.random.uniform(k1, (n_embed, n_hidden), dtype, -lim1, lim1)
    b1 = jax.random.uniform(k2, (n_hidden,), dtype, -lim1, lim1)
    w2 = jax.random.uniform(k3, (n_hidden, n_embed), dtype, -lim2, lim2)
    b2 = jax.random.uniform(k4, (n_embed,), dtype, -lim2, lim2)
    return w1, b1, w2, b2


if __name__ == "__main__":
    # Small shapes consistent with the module: batch=2, seq=8, n_embed=32,
    # n_hidden=128 (the usual 4*n_embed); dropout irrelevant in eval mode.
    B, T, n_embed, n_hidden = 2, 8, 32, 128

    key = jax.random.PRNGKey(0)
    kx, kp = jax.random.split(key)
    x = jax.random.normal(kx, (B, T, n_embed), jnp.float32)
    w1, b1, w2, b2 = init_expert_params(kp, n_embed, n_hidden)

    # High-precision plain-JAX reference.
    hp = jax.lax.Precision.HIGHEST
    h_ref = jnp.maximum(jnp.dot(x, w1, precision=hp) + b1, 0.0)
    ref = jnp.dot(h_ref, w2, precision=hp) + b2

    # Fast path: weights persisted in bf16 once (outside the jitted forward),
    # fp32 x cast per tile inside the kernel, fp32 accumulation.
    w1_bf, w2_bf = w1.astype(jnp.bfloat16), w2.astype(jnp.bfloat16)
    out = jax.block_until_ready(expert_forward(x, w1_bf, b1, w2_bf, b2))
    assert out.shape == x.shape and out.dtype == x.dtype
    assert jnp.allclose(out, ref, atol=2e-2, rtol=2e-2), \
        float(jnp.max(jnp.abs(out - ref)))

    # fp32 compute path: tight check of the fused math.
    out32 = jax.block_until_ready(
        expert_forward(x, w1, b1, w2, b2, compute_dtype=jnp.float32))
    assert jnp.allclose(out32, ref, atol=1e-3, rtol=1e-3), \
        float(jnp.max(jnp.abs(out32 - ref)))

    print("KERNEL_OK")
</pallas_src>

<mosaic_0001>
module attributes {stable_mosaic.version = 11 : i64} {
  func.func @_expert_kernel_resident(%arg0: i32, %arg1: memref<16x128xf32, #tpu.memory_space<vmem>>, %arg2: memref<128x128xbf16, #tpu.memory_space<vmem>>, %arg3: memref<1x128xf32, #tpu.memory_space<vmem>>, %arg4: memref<128x128xbf16, #tpu.memory_space<vmem>>, %arg5: memref<1x128xf32, #tpu.memory_space<vmem>>, %arg6: memref<16x128xf32, #tpu.memory_space<vmem>>) attributes {dimension_semantics = [#tpu.dimension_semantics<parallel>], iteration_bounds = array<i64: 1>, scalar_prefetch = 0 : i64, scratch_operands = 0 : i64, tpu.core_type = #tpu.core_type<tc>, window_params = [{transform_indices = @transform_0, window_bounds = array<i64: 16, 128>}, {pipeline_mode = #tpu.pipeline_mode<synchronous>, transform_indices = @transform_1, window_bounds = array<i64: 128, 128>}, {pipeline_mode = #tpu.pipeline_mode<synchronous>, transform_indices = @transform_2, window_bounds = array<i64: 1, 128>}, {pipeline_mode = #tpu.pipeline_mode<synchronous>, transform_indices = @transform_3, window_bounds = array<i64: 128, 128>}, {pipeline_mode = #tpu.pipeline_mode<synchronous>, transform_indices = @transform_4, window_bounds = array<i64: 1, 128>}, {transform_indices = @transform_5, window_bounds = array<i64: 16, 128>}]} {
    %c0 = arith.constant 0 : index
    %c0_0 = arith.constant 0 : index
    %0 = vector.load %arg1[%c0, %c0_0] : memref<16x128xf32, #tpu.memory_space<vmem>>, vector<16x128xf32>
    %1 = arith.truncf %0 : vector<16x128xf32> to vector<16x128xbf16>
    %c0_1 = arith.constant 0 : index
    %c0_2 = arith.constant 0 : index
    %2 = vector.load %arg2[%c0_1, %c0_2] : memref<128x128xbf16, #tpu.memory_space<vmem>>, vector<128x128xbf16>
    %cst = arith.constant dense<0.000000e+00> : vector<16x128xf32>
    %3 = tpu.matmul %1, %2, %cst {dimension_numbers = #tpu.dot_dimension_numbers<[1], [0], [0], [1], [0, 0, 1, 1], [], []>} : vector<16x128xbf16>, vector<128x128xbf16>, vector<16x128xf32> -> vector<16x128xf32>
    %c0_3 = arith.constant 0 : index
    %c0_4 = arith.constant 0 : index
    %4 = vector.load %arg3[%c0_3, %c0_4] : memref<1x128xf32, #tpu.memory_space<vmem>>, vector<1x128xf32>
    %5 = vector.broadcast %4 : vector<1x128xf32> to vector<16x128xf32>
    %6 = arith.addf %3, %5 : vector<16x128xf32>
    %cst_5 = arith.constant 0.000000e+00 : f32
    %7 = vector.broadcast %cst_5 : f32 to vector<16x128xf32>
    %8 = arith.maximumf %6, %7 : vector<16x128xf32>
    %9 = arith.truncf %8 : vector<16x128xf32> to vector<16x128xbf16>
    %c0_6 = arith.constant 0 : index
    %c0_7 = arith.constant 0 : index
    %10 = vector.load %arg4[%c0_6, %c0_7] : memref<128x128xbf16, #tpu.memory_space<vmem>>, vector<128x128xbf16>
    %cst_8 = arith.constant dense<0.000000e+00> : vector<16x128xf32>
    %11 = tpu.matmul %9, %10, %cst_8 {dimension_numbers = #tpu.dot_dimension_numbers<[1], [0], [0], [1], [0, 0, 1, 1], [], []>} : vector<16x128xbf16>, vector<128x128xbf16>, vector<16x128xf32> -> vector<16x128xf32>
    %c0_9 = arith.constant 0 : index
    %c0_10 = arith.constant 0 : index
    %12 = vector.load %arg5[%c0_9, %c0_10] : memref<1x128xf32, #tpu.memory_space<vmem>>, vector<1x128xf32>
    %13 = vector.broadcast %12 : vector<1x128xf32> to vector<16x128xf32>
    %14 = arith.addf %11, %13 : vector<16x128xf32>
    %c0_11 = arith.constant 0 : index
    %c0_12 = arith.constant 0 : index
    %15 = vector.load %arg6[%c0_11, %c0_12] : memref<16x128xf32, #tpu.memory_space<vmem>>, vector<16x128xf32>
    tpu.vector_store %arg6[%c0_11, %c0_12], %14 {strides = array<i32>} : memref<16x128xf32, #tpu.memory_space<vmem>>, vector<16x128xf32>,
    return
  }
  func.func @transform_0(%arg0: i32) -> (i32, i32) {
    %c0_i32 = arith.constant 0 : i32
    %c0_i32_0 = arith.constant 0 : i32
    return %arg0, %c0_i32 : i32, i32
  }
  func.func @transform_1(%arg0: i32) -> (i32, i32) {
    %c0_i32 = arith.constant 0 : i32
    %c0_i32_0 = arith.constant 0 : i32
    %c0_i32_1 = arith.constant 0 : i32
    return %c0_i32, %c0_i32_0 : i32, i32
  }
  func.func @transform_2(%arg0: i32) -> (i32, i32) {
    %c0_i32 = arith.constant 0 : i32
    %c0_i32_0 = arith.constant 0 : i32
    %c0_i32_1 = arith.constant 0 : i32
    return %c0_i32, %c0_i32_0 : i32, i32
  }
  func.func @transform_3(%arg0: i32) -> (i32, i32) {
    %c0_i32 = arith.constant 0 : i32
    %c0_i32_0 = arith.constant 0 : i32
    %c0_i32_1 = arith.constant 0 : i32
    return %c0_i32, %c0_i32_0 : i32, i32
  }
  func.func @transform_4(%arg0: i32) -> (i32, i32) {
    %c0_i32 = arith.constant 0 : i32
    %c0_i32_0 = arith.constant 0 : i32
    %c0_i32_1 = arith.constant 0 : i32
    return %c0_i32, %c0_i32_0 : i32, i32
  }
  func.func @transform_5(%arg0: i32) -> (i32, i32) {
    %c0_i32 = arith.constant 0 : i32
    %c0_i32_0 = arith.constant 0 : i32
    return %arg0, %c0_i32 : i32, i32
  }
}

</mosaic_0001>

<bundles_post_ra>
// kernel: expert_forward.1
= control target key start
LH: loop header
LB: loop body
LE: loop exit
PB: predicated region body
PF: predicated region fallthrough
CT: control target
= control target key end

     0   :  { %s374_s1 = inlined_call_operand.vmem [shape: bf16[128,128], index: 1, kind: input, shape index: {}]   ;;  %s375_s3 = inlined_call_operand.vmem [shape: bf16[128,128], index: 3, kind: input, shape index: {}]   ;;  %s376_s2 = inlined_call_operand.vmem [shape: f32[1,128], index: 2, kind: input, shape index: {}]   ;;  %s377_s0 = inlined_call_operand.vmem [shape: f32[16,128], index: 0, kind: input, shape index: {}]   ;;  %s378_s4 = inlined_call_operand.vmem [shape: f32[1,128], index: 4, kind: input, shape index: {}]   ;;  %s379_s5 = inlined_call_operand.vmem [shape: f32[16,128], index: 5, kind: output, shape index: {}]  }
   0x1   :  { %v267_v0 = vld [vmem:[%s374_s1 + $0x38] sm:$0xff]  ;;  %v266_v1 = vld [vmem:[%s374_s1 + $0x30] sm:$0xff]  ;;  %v265_v4 = vld [vmem:[%s374_s1 + $0x28] sm:$0xff] }
   0x2   :  { %91 = vmatpush.bf16.msra.mxu0 %v267_v0  ;;  %v275_v2 = vld [vmem:[%s375_s3 + $0x38] sm:$0xff]  ;;  %v274_v3 = vld [vmem:[%s375_s3 + $0x30] sm:$0xff]  ;;  %v273_v5 = vld [vmem:[%s375_s3 + $0x28] sm:$0xff] }
   0x3   :  { %176 = vmatpush.bf16.msra.mxu1 %v275_v2  ;;  %v264_v6 = vld [vmem:[%s374_s1 + $0x20] sm:$0xff]  ;;  %v263_v8 = vld [vmem:[%s374_s1 + $0x18] sm:$0xff]  ;;  %v262_v9 = vld [vmem:[%s374_s1 + $0x10] sm:$0xff] }
   0x4   :  { %v272_v7 = vld [vmem:[%s375_s3 + $0x20] sm:$0xff]  ;;  %v261_v10 = vld [vmem:[%s374_s1 + $0x8] sm:$0xff]  ;;  %v271_v15 = vld [vmem:[%s375_s3 + $0x18] sm:$0xff] }
   0x5   :  { %v260_v11 = vld [vmem:[%s374_s1] sm:$0xff]  ;;  %v21_v13 = vld [vmem:[%s377_s0 + $0x8] sm:$0xff]  ;;  %v270_v16 = vld [vmem:[%s375_s3 + $0x10] sm:$0xff] }
   0x6   :  { %92 = vmatpush.bf16.msra.mxu0 %v266_v1  ;;  %v20_v12 = vld [vmem:[%s377_s0] sm:$0xff]  ;;  %v269_v17 = vld [vmem:[%s375_s3 + $0x8] sm:$0xff] }
   0x7   :  { %177 = vmatpush.bf16.msra.mxu1 %v274_v3  ;;  %v22_v14 = vpack.c.bf16 %v21_v13, %v20_v12  ;;  %v268_v18 = vld [vmem:[%s375_s3] sm:$0xff] }
   0x8   :  { %v276_v20 = vld [vmem:[%s376_s2] ss:$0 sm:$0xff] }
   0x9   :  { %v277_v27 = vld [vmem:[%s378_s4] ss:$0 sm:$0xff] }
   0xa   :  { %93 = vmatpush.bf16.msra.mxu0 %v265_v4 }
   0xb   :  { %178 = vmatpush.bf16.msra.mxu1 %v273_v5 }
   0xe   :  { %94 = vmatpush.bf16.msra.mxu0 %v264_v6 }
   0xf   :  { %179 = vmatpush.bf16.msra.mxu1 %v272_v7 }
  0x12   :  { %95 = vmatpush.bf16.msra.mxu0 %v263_v8 }
  0x13   :  { %180 = vmatpush.bf16.msra.mxu1 %v271_v15 }
  0x16   :  { %96 = vmatpush.bf16.msra.mxu0 %v262_v9 }
  0x17   :  { %181 = vmatpush.bf16.msra.mxu1 %v270_v16 }
  0x1a   :  { %97 = vmatpush.bf16.msra.mxu0 %v261_v10 }
  0x1b   :  { %182 = vmatpush.bf16.msra.mxu1 %v269_v17 }
  0x1e   :  { %98 = vmatpush.bf16.msra.mxu0 %v260_v11 }
  0x1f   :  { %183 = vmatpush.bf16.msra.mxu1 %v268_v18 }
  0x21   :  { %99 = vmatmul.bf16.vlgmr.msra.gmra.mxu0 %v22_v14 }
  0x9e   :  { %v100_v19 = vpop.f32.mrf.mxu0 }
  0x9f   :  { %v101_v21 = vadd.f32 %v276_v20, %v100_v19 }
  0xa1   :  { %v105_v24 = vmax.f32 %v101_v21, 0.0 }
  0xa6   :  { %v102_v22 = vpop.f32.mrf.mxu0 }
  0xa7   :  { %v103_v23 = vadd.f32 %v276_v20, %v102_v22 }
  0xa9   :  { %v106_v25 = vmax.f32 %v103_v23, 0.0 }
  0xab   :  { %v107_v26 = vpack.c.bf16 %v106_v25, %v105_v24 }
  0xad   :  { %184 = vmatmul.bf16.vlgmr.msra.gmra.mxu1 %v107_v26 }
 0x12a   :  { %v185_v28 = vpop.f32.mrf.mxu1 }
 0x12b   :  { %v186_v29 = vadd.f32 %v277_v27, %v185_v28 }
 0x12d   :  { %190 = vst [vmem:[%s379_s5] sm:$0xff] %v186_v29 }
 0x132   :  { %v187_v30 = vpop.f32.mrf.mxu1 }
 0x133   :  { %v188_v31 = vadd.f32 %v277_v27, %v187_v30 }
 0x135   :  { %191 = vst [vmem:[%s379_s5 + $0x8] sm:$0xff] %v188_v31 }

</bundles_post_ra>
